<compile_context>
chip_gen: v7x
topology: tpu7x:2x2x1
jax: 0.10.0
libtpu: 0.0.40
codegen_flags: <defaults>
</compile_context>

<pallas_src>
import jax
import jax.numpy as jnp
from jax.experimental import pallas as pl
from jax.experimental.pallas import tpu as pltpu

_BN_EPS = 1e-5
_SELU_ALPHA = 1.6732632423543772848170429916717
_SELU_SCALE = 1.0507009873554804934193349852946
_LANE = 128


def _mlp_kernel(x_ref, g0_ref, b0_ref, w1_ref, bias1_ref, g1_ref, beta1_ref,
                w2_ref, bias2_ref, o_ref, xnorm_ref, acc_ref):
    k = pl.program_id(1)               # embed (reduction) tile
    nk = pl.num_programs(1)

    # --- BN0 over the batch: recomputed once per output tile (k == 0) and
    #     cached in VMEM scratch for the remaining embed tiles. ---
    @pl.when(k == 0)
    def _():
        x = x_ref[...].astype(jnp.float32)
        mean0 = jnp.mean(x, axis=0, keepdims=True)
        var0 = jnp.mean((x - mean0) ** 2, axis=0, keepdims=True)
        xn = (x - mean0) * jax.lax.rsqrt(var0 + _BN_EPS)
        xnorm_ref[...] = xn * g0_ref[...] + b0_ref[...]
        acc_ref[...] = jnp.zeros_like(acc_ref)

    # --- Linear1 for this embed tile (bf16 operands, f32 accumulation) ---
    h = jnp.dot(xnorm_ref[...].astype(jnp.bfloat16), w1_ref[...],
                preferred_element_type=jnp.float32) + bias1_ref[...]

    # --- SELU (f32 elementwise; exp(min(h,0)) avoids inf on discarded lane) ---
    h = _SELU_SCALE * jnp.where(
        h > 0, h, _SELU_ALPHA * (jnp.exp(jnp.minimum(h, 0.0)) - 1.0))

    # --- BN1 over the batch (full batch resident -> per-feature stats exact,
    #     and per-feature normalization is independent across embed tiles) ---
    mean1 = jnp.mean(h, axis=0, keepdims=True)
    var1 = jnp.mean((h - mean1) ** 2, axis=0, keepdims=True)
    h = (h - mean1) * jax.lax.rsqrt(var1 + _BN_EPS)
    h = h * g1_ref[...] + beta1_ref[...]

    # --- Dropout: identity (see TODO at top) ---

    # --- Linear2: accumulate this embed tile's contribution ---
    acc_ref[...] += jnp.dot(h.astype(jnp.bfloat16), w2_ref[...],
                            preferred_element_type=jnp.float32)

    @pl.when(k == nk - 1)
    def _():
        o_ref[...] = (acc_ref[...] + bias2_ref[...]).astype(o_ref.dtype)


def _pad_axis(a, axis, mult):
    pad = (-a.shape[axis]) % mult
    if pad == 0:
        return a
    widths = [(0, 0)] * a.ndim
    widths[axis] = (0, pad)
    return jnp.pad(a, widths)


def _pick_tile(dim_padded, max_tile=512):
    """Largest multiple-of-128 tile <= max_tile that divides dim_padded."""
    t = min(dim_padded, max_tile)
    while dim_padded % t:
        t -= _LANE
    return t


def mlp_forward(x, params):
    """x: (B, input_dim) f32.  params: dict of weights (see init_params)."""
    B, _ = x.shape
    output_dim = params["w2"].shape[1]

    # Lane-dense padding of all feature dims (zeros are exactly neutral for
    # BN / matmul here; the padded output columns are sliced away below).
    x_p = _pad_axis(x, 1, _LANE)
    g0 = _pad_axis(params["gamma0"], 1, _LANE)
    b0 = _pad_axis(params["beta0"], 1, _LANE)
    w1 = _pad_axis(_pad_axis(params["w1"], 0, _LANE), 1, _LANE).astype(jnp.bfloat16)
    bias1 = _pad_axis(params["bias1"], 1, _LANE)
    g1 = _pad_axis(params["gamma1"], 1, _LANE)
    beta1 = _pad_axis(params["beta1"], 1, _LANE)
    w2 = _pad_axis(_pad_axis(params["w2"], 0, _LANE), 1, _LANE).astype(jnp.bfloat16)
    bias2 = _pad_axis(params["bias2"], 1, _LANE)

    din_p = x_p.shape[1]
    demb_p = w1.shape[1]
    dout_p = w2.shape[1]

    te = _pick_tile(demb_p)      # embed (reduction) tile
    to = _pick_tile(dout_p)      # output (parallel) tile
    grid = (dout_p // to, demb_p // te)

    out_p = pl.pallas_call(
        _mlp_kernel,
        out_shape=jax.ShapeDtypeStruct((B, dout_p), jnp.float32),
        grid_spec=pltpu.PrefetchScalarGridSpec(
            num_scalar_prefetch=0,
            grid=grid,
            in_specs=[
                pl.BlockSpec((B, din_p), lambda j, k: (0, 0)),    # x (whole)
                pl.BlockSpec((1, din_p), lambda j, k: (0, 0)),    # gamma0
                pl.BlockSpec((1, din_p), lambda j, k: (0, 0)),    # beta0
                pl.BlockSpec((din_p, te), lambda j, k: (0, k)),   # w1 tile
                pl.BlockSpec((1, te), lambda j, k: (0, k)),       # bias1 tile
                pl.BlockSpec((1, te), lambda j, k: (0, k)),       # gamma1 tile
                pl.BlockSpec((1, te), lambda j, k: (0, k)),       # beta1 tile
                pl.BlockSpec((te, to), lambda j, k: (k, j)),      # w2 tile
                pl.BlockSpec((1, to), lambda j, k: (0, j)),       # bias2 tile
            ],
            out_specs=pl.BlockSpec((B, to), lambda j, k: (0, j)),
            scratch_shapes=[
                pltpu.VMEM((B, din_p), jnp.float32),   # cached BN0(x)
                pltpu.VMEM((B, to), jnp.float32),      # output accumulator
            ],
        ),
        compiler_params=pltpu.CompilerParams(
            dimension_semantics=("parallel", "arbitrary"),
            vmem_limit_bytes=32 * 1024 * 1024,
        ),
    )(x_p, g0, b0, w1, bias1, g1, beta1, w2, bias2)

    return out_p[:, :output_dim]


def init_params(key, input_dim, embed_dim, output_dim):
    """Deterministic synthetic parameters (PyTorch-like Linear init ranges)."""
    k1, k2, k3, k4 = jax.random.split(key, 4)
    lim1 = 1.0 / jnp.sqrt(input_dim)
    lim2 = 1.0 / jnp.sqrt(embed_dim)
    return {
        # BatchNorm1d(input_dim) affine params, kept 2-D for lane layout.
        "gamma0": jnp.ones((1, input_dim), jnp.float32),
        "beta0": jnp.zeros((1, input_dim), jnp.float32),
        # Linear(input_dim, embed_dim): stored pre-transposed as (in, out).
        "w1": jax.random.uniform(k1, (input_dim, embed_dim), jnp.float32,
                                 -lim1, lim1),
        "bias1": jax.random.uniform(k2, (1, embed_dim), jnp.float32,
                                    -lim1, lim1),
        # BatchNorm1d(embed_dim) affine params.
        "gamma1": jnp.ones((1, embed_dim), jnp.float32),
        "beta1": jnp.zeros((1, embed_dim), jnp.float32),
        # Linear(embed_dim, output_dim): pre-transposed (in, out).
        "w2": jax.random.uniform(k3, (embed_dim, output_dim), jnp.float32,
                                 -lim2, lim2),
        "bias2": jax.random.uniform(k4, (1, output_dim), jnp.float32,
                                    -lim2, lim2),
    }


def _reference(x, p):
    """Pure-JAX reference mirroring the kernel's bf16-matmul / f32-acc math."""
    m0 = jnp.mean(x, axis=0, keepdims=True)
    v0 = jnp.mean((x - m0) ** 2, axis=0, keepdims=True)
    h = (x - m0) * jax.lax.rsqrt(v0 + _BN_EPS) * p["gamma0"] + p["beta0"]
    h = jnp.dot(h.astype(jnp.bfloat16), p["w1"].astype(jnp.bfloat16),
                preferred_element_type=jnp.float32) + p["bias1"]
    h = _SELU_SCALE * jnp.where(
        h > 0, h, _SELU_ALPHA * (jnp.exp(jnp.minimum(h, 0.0)) - 1.0))
    m1 = jnp.mean(h, axis=0, keepdims=True)
    v1 = jnp.mean((h - m1) ** 2, axis=0, keepdims=True)
    h = (h - m1) * jax.lax.rsqrt(v1 + _BN_EPS) * p["gamma1"] + p["beta1"]
    return jnp.dot(h.astype(jnp.bfloat16), p["w2"].astype(jnp.bfloat16),
                   preferred_element_type=jnp.float32) + p["bias2"]


if __name__ == "__main__":
    key = jax.random.PRNGKey(0)
    k_x, k_p = jax.random.split(key)

    batch, input_dim, embed_dim, output_dim = 8, 16, 32, 8
    x = jax.random.normal(k_x, (batch, input_dim), jnp.float32)
    params = init_params(k_p, input_dim, embed_dim, output_dim)

    out = jax.block_until_ready(mlp_forward(x, params))

    ref = _reference(x, params)
    assert out.shape == (batch, output_dim)
    assert jnp.allclose(out, ref, atol=1e-3, rtol=1e-3), "mismatch vs reference"

    print("KERNEL_OK")
</pallas_src>

<mosaic_0001>
module attributes {stable_mosaic.version = 11 : i64} {
  func.func @_mlp_kernel(%arg0: i32, %arg1: i32, %arg2: memref<8x128xf32, #tpu.memory_space<vmem>>, %arg3: memref<1x128xf32, #tpu.memory_space<vmem>>, %arg4: memref<1x128xf32, #tpu.memory_space<vmem>>, %arg5: memref<128x128xbf16, #tpu.memory_space<vmem>>, %arg6: memref<1x128xf32, #tpu.memory_space<vmem>>, %arg7: memref<1x128xf32, #tpu.memory_space<vmem>>, %arg8: memref<1x128xf32, #tpu.memory_space<vmem>>, %arg9: memref<128x128xbf16, #tpu.memory_space<vmem>>, %arg10: memref<1x128xf32, #tpu.memory_space<vmem>>, %arg11: memref<8x128xf32, #tpu.memory_space<vmem>>, %arg12: memref<8x128xf32, #tpu.memory_space<vmem>>, %arg13: memref<8x128xf32, #tpu.memory_space<vmem>>) attributes {dimension_semantics = [#tpu.dimension_semantics<parallel>, #tpu.dimension_semantics<arbitrary>], iteration_bounds = array<i64: 1, 1>, scalar_prefetch = 0 : i64, scratch_operands = 2 : i64, tpu.core_type = #tpu.core_type<tc>, window_params = [{pipeline_mode = #tpu.pipeline_mode<synchronous>, transform_indices = @transform_0, window_bounds = array<i64: 8, 128>}, {pipeline_mode = #tpu.pipeline_mode<synchronous>, transform_indices = @transform_1, window_bounds = array<i64: 1, 128>}, {pipeline_mode = #tpu.pipeline_mode<synchronous>, transform_indices = @transform_2, window_bounds = array<i64: 1, 128>}, {transform_indices = @transform_3, window_bounds = array<i64: 128, 128>}, {transform_indices = @transform_4, window_bounds = array<i64: 1, 128>}, {transform_indices = @transform_5, window_bounds = array<i64: 1, 128>}, {transform_indices = @transform_6, window_bounds = array<i64: 1, 128>}, {transform_indices = @transform_7, window_bounds = array<i64: 128, 128>}, {transform_indices = @transform_8, window_bounds = array<i64: 1, 128>}, {transform_indices = @transform_9, window_bounds = array<i64: 8, 128>}]} {
    %c0_i32 = arith.constant 0 : i32
    %0 = arith.cmpi eq, %arg1, %c0_i32 : i32
    %1 = arith.extui %0 : i1 to i32
    %c0_i32_0 = arith.constant 0 : i32
    %2 = arith.cmpi ne, %1, %c0_i32_0 : i32
    scf.if %2 {
      %c0_29 = arith.constant 0 : index
      %c0_30 = arith.constant 0 : index
      %55 = vector.load %arg2[%c0_29, %c0_30] : memref<8x128xf32, #tpu.memory_space<vmem>>, vector<8x128xf32>
      %cst_31 = arith.constant dense<0.000000e+00> : vector<128xf32>
      %56 = vector.multi_reduction <add>, %55, %cst_31 [0] : vector<8x128xf32> to vector<128xf32>
      %57 = vector.shape_cast %56 : vector<128xf32> to vector<1x128xf32>
      %cst_32 = arith.constant 8.000000e+00 : f32
      %58 = vector.broadcast %cst_32 : f32 to vector<1x128xf32>
      %59 = arith.divf %57, %58 : vector<1x128xf32>
      %60 = vector.broadcast %59 : vector<1x128xf32> to vector<8x128xf32>
      %61 = arith.subf %55, %60 : vector<8x128xf32>
      %62 = arith.mulf %61, %61 : vector<8x128xf32>
      %cst_33 = arith.constant dense<0.000000e+00> : vector<128xf32>
      %63 = vector.multi_reduction <add>, %62, %cst_33 [0] : vector<8x128xf32> to vector<128xf32>
      %64 = vector.shape_cast %63 : vector<128xf32> to vector<1x128xf32>
      %cst_34 = arith.constant 8.000000e+00 : f32
      %65 = vector.broadcast %cst_34 : f32 to vector<1x128xf32>
      %66 = arith.divf %64, %65 : vector<1x128xf32>
      %67 = vector.broadcast %59 : vector<1x128xf32> to vector<8x128xf32>
      %68 = arith.subf %55, %67 : vector<8x128xf32>
      %cst_35 = arith.constant 9.99999974E-6 : f32
      %69 = vector.broadcast %cst_35 : f32 to vector<1x128xf32>
      %70 = arith.addf %66, %69 : vector<1x128xf32>
      %71 = math.rsqrt %70 : vector<1x128xf32>
      %72 = vector.broadcast %71 : vector<1x128xf32> to vector<8x128xf32>
      %73 = arith.mulf %68, %72 : vector<8x128xf32>
      %c0_36 = arith.constant 0 : index
      %c0_37 = arith.constant 0 : index
      %74 = vector.load %arg3[%c0_36, %c0_37] : memref<1x128xf32, #tpu.memory_space<vmem>>, vector<1x128xf32>
      %75 = vector.broadcast %74 : vector<1x128xf32> to vector<8x128xf32>
      %76 = arith.mulf %73, %75 : vector<8x128xf32>
      %c0_38 = arith.constant 0 : index
      %c0_39 = arith.constant 0 : index
      %77 = vector.load %arg4[%c0_38, %c0_39] : memref<1x128xf32, #tpu.memory_space<vmem>>, vector<1x128xf32>
      %78 = vector.broadcast %77 : vector<1x128xf32> to vector<8x128xf32>
      %79 = arith.addf %76, %78 : vector<8x128xf32>
      %c0_40 = arith.constant 0 : index
      %c0_41 = arith.constant 0 : index
      %80 = vector.load %arg12[%c0_40, %c0_41] : memref<8x128xf32, #tpu.memory_space<vmem>>, vector<8x128xf32>
      tpu.vector_store %arg12[%c0_40, %c0_41], %79 {strides = array<i32>} : memref<8x128xf32, #tpu.memory_space<vmem>>, vector<8x128xf32>,
      %cst_42 = arith.constant 0.000000e+00 : f32
      %81 = vector.broadcast %cst_42 : f32 to vector<8x128xf32>
      %c0_43 = arith.constant 0 : index
      %c0_44 = arith.constant 0 : index
      %82 = vector.load %arg13[%c0_43, %c0_44] : memref<8x128xf32, #tpu.memory_space<vmem>>, vector<8x128xf32>
      tpu.vector_store %arg13[%c0_43, %c0_44], %81 {strides = array<i32>} : memref<8x128xf32, #tpu.memory_space<vmem>>, vector<8x128xf32>,
    } else {
    }
    %c0 = arith.constant 0 : index
    %c0_1 = arith.constant 0 : index
    %3 = vector.load %arg12[%c0, %c0_1] : memref<8x128xf32, #tpu.memory_space<vmem>>, vector<8x128xf32>
    %4 = arith.truncf %3 : vector<8x128xf32> to vector<8x128xbf16>
    %c0_2 = arith.constant 0 : index
    %c0_3 = arith.constant 0 : index
    %5 = vector.load %arg5[%c0_2, %c0_3] : memref<128x128xbf16, #tpu.memory_space<vmem>>, vector<128x128xbf16>
    %cst = arith.constant dense<0.000000e+00> : vector<8x128xf32>
    %6 = tpu.matmul %4, %5, %cst {dimension_numbers = #tpu.dot_dimension_numbers<[1], [0], [0], [1], [0, 0, 1, 1], [], []>} : vector<8x128xbf16>, vector<128x128xbf16>, vector<8x128xf32> -> vector<8x128xf32>
    %c0_4 = arith.constant 0 : index
    %c0_5 = arith.constant 0 : index
    %7 = vector.load %arg6[%c0_4, %c0_5] : memref<1x128xf32, #tpu.memory_space<vmem>>, vector<1x128xf32>
    %8 = vector.broadcast %7 : vector<1x128xf32> to vector<8x128xf32>
    %9 = arith.addf %6, %8 : vector<8x128xf32>
    %cst_6 = arith.constant 0.000000e+00 : f32
    %10 = vector.broadcast %cst_6 : f32 to vector<8x128xf32>
    %11 = arith.cmpf ogt, %9, %10 : vector<8x128xf32>
    %cst_7 = arith.constant 0.000000e+00 : f32
    %12 = vector.broadcast %cst_7 : f32 to vector<8x128xf32>
    %13 = arith.minimumf %9, %12 : vector<8x128xf32>
    %14 = math.exp %13 : vector<8x128xf32>
    %cst_8 = arith.constant 1.000000e+00 : f32
    %15 = vector.broadcast %cst_8 : f32 to vector<8x128xf32>
    %16 = arith.subf %14, %15 : vector<8x128xf32>
    %cst_9 = arith.constant 1.67326319 : f32
    %17 = vector.broadcast %cst_9 : f32 to vector<8x128xf32>
    %18 = arith.mulf %17, %16 : vector<8x128xf32>
    %19 = arith.select %11, %9, %18 : vector<8x128xi1>, vector<8x128xf32>
    %cst_10 = arith.constant 1.05070102 : f32
    %20 = vector.broadcast %cst_10 : f32 to vector<8x128xf32>
    %21 = arith.mulf %20, %19 : vector<8x128xf32>
    %cst_11 = arith.constant dense<0.000000e+00> : vector<128xf32>
    %22 = vector.multi_reduction <add>, %21, %cst_11 [0] : vector<8x128xf32> to vector<128xf32>
    %23 = vector.shape_cast %22 : vector<128xf32> to vector<1x128xf32>
    %cst_12 = arith.constant 8.000000e+00 : f32
    %24 = vector.broadcast %cst_12 : f32 to vector<1x128xf32>
    %25 = arith.divf %23, %24 : vector<1x128xf32>
    %26 = vector.broadcast %25 : vector<1x128xf32> to vector<8x128xf32>
    %27 = arith.subf %21, %26 : vector<8x128xf32>
    %28 = arith.mulf %27, %27 : vector<8x128xf32>
    %cst_13 = arith.constant dense<0.000000e+00> : vector<128xf32>
    %29 = vector.multi_reduction <add>, %28, %cst_13 [0] : vector<8x128xf32> to vector<128xf32>
    %30 = vector.shape_cast %29 : vector<128xf32> to vector<1x128xf32>
    %cst_14 = arith.constant 8.000000e+00 : f32
    %31 = vector.broadcast %cst_14 : f32 to vector<1x128xf32>
    %32 = arith.divf %30, %31 : vector<1x128xf32>
    %33 = vector.broadcast %25 : vector<1x128xf32> to vector<8x128xf32>
    %34 = arith.subf %21, %33 : vector<8x128xf32>
    %cst_15 = arith.constant 9.99999974E-6 : f32
    %35 = vector.broadcast %cst_15 : f32 to vector<1x128xf32>
    %36 = arith.addf %32, %35 : vector<1x128xf32>
    %37 = math.rsqrt %36 : vector<1x128xf32>
    %38 = vector.broadcast %37 : vector<1x128xf32> to vector<8x128xf32>
    %39 = arith.mulf %34, %38 : vector<8x128xf32>
    %c0_16 = arith.constant 0 : index
    %c0_17 = arith.constant 0 : index
    %40 = vector.load %arg7[%c0_16, %c0_17] : memref<1x128xf32, #tpu.memory_space<vmem>>, vector<1x128xf32>
    %41 = vector.broadcast %40 : vector<1x128xf32> to vector<8x128xf32>
    %42 = arith.mulf %39, %41 : vector<8x128xf32>
    %c0_18 = arith.constant 0 : index
    %c0_19 = arith.constant 0 : index
    %43 = vector.load %arg8[%c0_18, %c0_19] : memref<1x128xf32, #tpu.memory_space<vmem>>, vector<1x128xf32>
    %44 = vector.broadcast %43 : vector<1x128xf32> to vector<8x128xf32>
    %45 = arith.addf %42, %44 : vector<8x128xf32>
    %c0_20 = arith.constant 0 : index
    %c0_21 = arith.constant 0 : index
    %46 = vector.load %arg13[%c0_20, %c0_21] : memref<8x128xf32, #tpu.memory_space<vmem>>, vector<8x128xf32>
    %47 = arith.truncf %45 : vector<8x128xf32> to vector<8x128xbf16>
    %c0_22 = arith.constant 0 : index
    %c0_23 = arith.constant 0 : index
    %48 = vector.load %arg9[%c0_22, %c0_23] : memref<128x128xbf16, #tpu.memory_space<vmem>>, vector<128x128xbf16>
    %cst_24 = arith.constant dense<0.000000e+00> : vector<8x128xf32>
    %49 = tpu.matmul %47, %48, %cst_24 {dimension_numbers = #tpu.dot_dimension_numbers<[1], [0], [0], [1], [0, 0, 1, 1], [], []>} : vector<8x128xbf16>, vector<128x128xbf16>, vector<8x128xf32> -> vector<8x128xf32>
    %50 = arith.addf %46, %49 : vector<8x128xf32>
    %c0_25 = arith.constant 0 : index
    %c0_26 = arith.constant 0 : index
    %51 = vector.load %arg13[%c0_25, %c0_26] : memref<8x128xf32, #tpu.memory_space<vmem>>, vector<8x128xf32>
    tpu.vector_store %arg13[%c0_25, %c0_26], %50 {strides = array<i32>} : memref<8x128xf32, #tpu.memory_space<vmem>>, vector<8x128xf32>,
    %c0_i32_27 = arith.constant 0 : i32
    %52 = arith.cmpi eq, %arg1, %c0_i32_27 : i32
    %53 = arith.extui %52 : i1 to i32
    %c0_i32_28 = arith.constant 0 : i32
    %54 = arith.cmpi ne, %53, %c0_i32_28 : i32
    scf.if %54 {
      %c0_29 = arith.constant 0 : index
      %c0_30 = arith.constant 0 : index
      %55 = vector.load %arg13[%c0_29, %c0_30] : memref<8x128xf32, #tpu.memory_space<vmem>>, vector<8x128xf32>
      %c0_31 = arith.constant 0 : index
      %c0_32 = arith.constant 0 : index
      %56 = vector.load %arg10[%c0_31, %c0_32] : memref<1x128xf32, #tpu.memory_space<vmem>>, vector<1x128xf32>
      %57 = vector.broadcast %56 : vector<1x128xf32> to vector<8x128xf32>
      %58 = arith.addf %55, %57 : vector<8x128xf32>
      %c0_33 = arith.constant 0 : index
      %c0_34 = arith.constant 0 : index
      %59 = vector.load %arg11[%c0_33, %c0_34] : memref<8x128xf32, #tpu.memory_space<vmem>>, vector<8x128xf32>
      tpu.vector_store %arg11[%c0_33, %c0_34], %58 {strides = array<i32>} : memref<8x128xf32, #tpu.memory_space<vmem>>, vector<8x128xf32>,
    } else {
    }
    return
  }
  func.func @transform_0(%arg0: i32, %arg1: i32) -> (i32, i32) {
    %c0_i32 = arith.constant 0 : i32
    %c0_i32_0 = arith.constant 0 : i32
    %c0_i32_1 = arith.constant 0 : i32
    return %c0_i32, %c0_i32_0 : i32, i32
  }
  func.func @transform_1(%arg0: i32, %arg1: i32) -> (i32, i32) {
    %c0_i32 = arith.constant 0 : i32
    %c0_i32_0 = arith.constant 0 : i32
    %c0_i32_1 = arith.constant 0 : i32
    return %c0_i32, %c0_i32_0 : i32, i32
  }
  func.func @transform_2(%arg0: i32, %arg1: i32) -> (i32, i32) {
    %c0_i32 = arith.constant 0 : i32
    %c0_i32_0 = arith.constant 0 : i32
    %c0_i32_1 = arith.constant 0 : i32
    return %c0_i32, %c0_i32_0 : i32, i32
  }
  func.func @transform_3(%arg0: i32, %arg1: i32) -> (i32, i32) {
    %c0_i32 = arith.constant 0 : i32
    %c0_i32_0 = arith.constant 0 : i32
    return %c0_i32, %arg1 : i32, i32
  }
  func.func @transform_4(%arg0: i32, %arg1: i32) -> (i32, i32) {
    %c0_i32 = arith.constant 0 : i32
    %c0_i32_0 = arith.constant 0 : i32
    return %c0_i32, %arg1 : i32, i32
  }
  func.func @transform_5(%arg0: i32, %arg1: i32) -> (i32, i32) {
    %c0_i32 = arith.constant 0 : i32
    %c0_i32_0 = arith.constant 0 : i32
    return %c0_i32, %arg1 : i32, i32
  }
  func.func @transform_6(%arg0: i32, %arg1: i32) -> (i32, i32) {
    %c0_i32 = arith.constant 0 : i32
    %c0_i32_0 = arith.constant 0 : i32
    return %c0_i32, %arg1 : i32, i32
  }
  func.func @transform_7(%arg0: i32, %arg1: i32) -> (i32, i32) {
    %c0_i32 = arith.constant 0 : i32
    return %arg1, %arg0 : i32, i32
  }
  func.func @transform_8(%arg0: i32, %arg1: i32) -> (i32, i32) {
    %c0_i32 = arith.constant 0 : i32
    %c0_i32_0 = arith.constant 0 : i32
    return %c0_i32, %arg0 : i32, i32
  }
  func.func @transform_9(%arg0: i32, %arg1: i32) -> (i32, i32) {
    %c0_i32 = arith.constant 0 : i32
    %c0_i32_0 = arith.constant 0 : i32
    return %c0_i32, %arg0 : i32, i32
  }
}

</mosaic_0001>

<bundles_post_ra>
// kernel: tpu_custom_call.1
= control target key start
LH: loop header
LB: loop body
LE: loop exit
PB: predicated region body
PF: predicated region fallthrough
CT: control target
= control target key end

     0   :  { %14 = vsyncpa [#allocation5], 0  ;;  %s763_s0 = inlined_call_operand.hbm [shape: f32[8,128], index: 0, kind: input, shape index: {}]   ;;  %s764_s1 = inlined_call_operand.vmem [shape: f32[1,128], index: 1, kind: input, shape index: {}]   ;;  %s765_s2 = inlined_call_operand.vmem [shape: f32[1,128], index: 2, kind: input, shape index: {}]   ;;  %s766_s3 = inlined_call_operand.hbm [shape: bf16[128,128], index: 3, kind: input, shape index: {}]   ;;  %s767_s4 = inlined_call_operand.vmem [shape: f32[1,128], index: 4, kind: input, shape index: {}]   ;;  %s768_s5 = inlined_call_operand.vmem [shape: f32[1,128], index: 5, kind: input, shape index: {}]   ;;  %s769_s6 = inlined_call_operand.vmem [shape: f32[1,128], index: 6, kind: input, shape index: {}]   ;;  %s770_s7 = inlined_call_operand.hbm [shape: bf16[128,128], index: 7, kind: input, shape index: {}]   ;;  %s771_s8 = inlined_call_operand.vmem [shape: f32[1,128], index: 8, kind: input, shape index: {}]   ;;  %s772_s9 = inlined_call_operand.hbm [shape: f32[8,128], index: 9, kind: output, shape index: {}]  }
   0x1   :  { %15 = vsyncpa [#allocation8], 0 }
   0x2   :  { %16 = vsyncpa [#allocation6], 0  ;;  %s615_s30 = smov [#allocation7]   ;;  %s521_s13 = scalar_lea.hbm %s766_s3, 1024 }
   0x3   :  { %s36_s10 = sshll.u32 %s615_s30, 4  ;;  %p522_p0 = scmp.ne.s32.totalorder %s766_s3, %s521_s13  ;;  %s37_s10 = int_to_ptr.vmem [resolvable:$true] %s36_s10 }
   0x4   :  { %p525_p1 = scmp.lt.u32.totalorder %s521_s13, %s766_s3 }
   0x6   :  { %p527_p2 = pnand %p525_p1, %p522_p0 }
   0x8   :  { %530 = shalt.err (!%p527_p2)
}
   0x9   :  { %s531_s18 = scalar_lea.vmem %s37_s10, 1024  ;;  %p536_p4 = scmp.lt.s32.totalorder %s37_s10, %s37_s10 }
   0xa   :  { %p532_p3 = scmp.ne.s32.totalorder %s37_s10, %s531_s18  ;;  %p537_p5 = scmp.lt.s32.totalorder %s531_s18, %s531_s18 }
   0xc   :  { %p538_p6 = por %p537_p5, %p536_p4 }
   0xe   :  { %p539_p7 = pnand %p538_p6, %p532_p3 }
  0x10   :  { %542 = shalt.err (!%p539_p7)
}
  0x11   :  { %s616_s19 = smov 64   ;;  %s617_s20 = smov 4  }
  0x12   :  { %42 = dma.hbm_to_vmem [thread:$0]  %s766_s3, 1024, %s37_s10, [#allocation8], %s616_s19, %s616_s19, %s617_s20  }
  0x13   :  { %s618_s23 = smov [#allocation4]   ;;  %s619_s25 = smov [#allocation9]  }
  0x14   :  { %s23_s24 = sshll.u32 %s618_s23, 4  ;;  %s54_s26 = sshll.u32 %s619_s25, 4  ;;  %s24_s24 = int_to_ptr.vmem [resolvable:$true] %s23_s24  ;;  %s55_s26 = int_to_ptr.vmem [resolvable:$true] %s54_s26 }
  0x15   :  { %s543_s29 = scalar_lea.hbm %s763_s0, 128 }
  0x16   :  { %p544_p8 = scmp.ne.s32.totalorder %s763_s0, %s543_s29  ;;  %p547_p9 = scmp.lt.u32.totalorder %s543_s29, %s763_s0 }
  0x18   :  { %p549_p10 = pnand %p547_p9, %p544_p8 }
  0x1a   :  { %552 = shalt.err (!%p549_p10)
}
  0x1b   :  { %s553_s3 = scalar_lea.vmem %s24_s24, 128  ;;  %p558_p12 = scmp.lt.s32.totalorder %s24_s24, %s24_s24 }
  0x1c   :  { %p554_p11 = scmp.ne.s32.totalorder %s24_s24, %s553_s3  ;;  %p559_p13 = scmp.lt.s32.totalorder %s553_s3, %s553_s3 }
  0x1e   :  { %p560_p0 = por %p559_p13, %p558_p12 }
  0x20   :  { %p561_p1 = pnand %p560_p0, %p554_p11 }
  0x22   :  { %564 = shalt.err (!%p561_p1)
}
  0x23   :  { %26 = dma.hbm_to_vmem [thread:$0]  %s763_s0, 128, %s24_s24, [#allocation5]  }
  0x24   :  { %s565_s17 = scalar_lea.hbm %s770_s7, 1024 }
  0x25   :  { %p566_p2 = scmp.ne.s32.totalorder %s770_s7, %s565_s17  ;;  %p569_p3 = scmp.lt.u32.totalorder %s565_s17, %s770_s7 }
  0x27   :  { %p571_p4 = pnand %p569_p3, %p566_p2 }
  0x29   :  { %574 = shalt.err (!%p571_p4)
}
  0x2a   :  { %s575_s25 = scalar_lea.vmem %s55_s26, 1024  ;;  %p580_p6 = scmp.lt.s32.totalorder %s55_s26, %s55_s26 }
  0x2b   :  { %p576_p5 = scmp.ne.s32.totalorder %s55_s26, %s575_s25  ;;  %p581_p7 = scmp.lt.s32.totalorder %s575_s25, %s575_s25 }
  0x2d   :  { %p582_p8 = por %p581_p7, %p580_p6 }
  0x2f   :  { %p583_p9 = pnand %p582_p8, %p576_p5 }
  0x31   :  { %586 = shalt.err (!%p583_p9)
}
  0x32   :  { %60 = dma.hbm_to_vmem [thread:$0]  %s770_s7, 1024, %s55_s26, [#allocation8], %s616_s19, %s616_s19, %s617_s20  }
  0x33   :  { %609 = dma.done.wait [#allocation5], 128  }
  0x34   :  { %610 = vsyncadd [#allocation5], 4294967168 }
  0x35   :  { %611 = dma.done.wait [#allocation8], 2048  }
  0x36   :  { %612 = vsyncadd [#allocation8], 4294965248  ;;  %v620_v0 = vmov 0.0   ;;  %vm621_vm0 = vmmov 0   ;;  %v499_v1 = vld [vmem:[#allocation7] sm:$0xff]   ;;  %v500_v2 = vld [vmem:[#allocation7 + $0x8] sm:$0xff]  }
  0x37   :  { %451 = vmatprep.subr.bf16.mxu0 %v620_v0  ;;  %467 = vmatprep.mubr.msk.bf16.mxu0 %vm621_vm0, %v620_v0  ;;  %v501_v3 = vld [vmem:[#allocation7 + $0x10] sm:$0xff]   ;;  %v77_v4 = vld [vmem:[#allocation4] sm:$0xff]  ;;  %v503_v8 = vld [vmem:[#allocation7 + $0x20] sm:$0xff]   ;;  %s622_s12 = smov [#allocation10]  }
  0x38   :  { %471 = vmatprep.subr.bf16.mxu1 %v620_v0  ;;  %487 = vmatprep.mubr.msk.bf16.mxu1 %vm621_vm0, %v620_v0  ;;  %v502_v5 = vld [vmem:[#allocation7 + $0x18] sm:$0xff]   ;;  %v78_v6 = vrot.slane %v77_v4, 4  ;;  %v504_v12 = vld [vmem:[#allocation7 + $0x28] sm:$0xff]   ;;  %v505_v15 = vld [vmem:[#allocation7 + $0x30] sm:$0xff]   ;;  %s400_s13 = sshll.u32 %s622_s12, 4  ;;  %s401_s13 = int_to_ptr.vmem [resolvable:$true] %s400_s13 }
  0x39   :  { %452 = vmatpush3.bf16.msra.mxu0 %v499_v1  ;;  %v506_v18 = vld [vmem:[#allocation7 + $0x38] sm:$0xff]   ;;  %v507_v34 = vld [vmem:[#allocation9] sm:$0xff]   ;;  %v508_v35 = vld [vmem:[#allocation9 + $0x8] sm:$0xff]   ;;  %p592_p11 = scmp.lt.s32.totalorder %s401_s13, %s401_s13 }
  0x3a   :  { %453 = vmatprep.subr.bf16.mxu0 %v620_v0  ;;  %v79_v7 = vadd.f32 %v78_v6, %v77_v4  ;;  %v410_v28 = vld [vmem:[%s764_s1] ss:$0 sm:$0xff]  ;;  %472 = vmatpush3.bf16.msra.mxu1 %v507_v34  ;;  %v509_v36 = vld [vmem:[#allocation9 + $0x10] sm:$0xff]   ;;  %v511_v38 = vld [vmem:[#allocation9 + $0x20] sm:$0xff]  }
  0x3b   :  { %v411_v30 = vld [vmem:[%s765_s2] ss:$0 sm:$0xff]  ;;  %473 = vmatprep.subr.bf16.mxu1 %v620_v0  ;;  %v512_v39 = vld [vmem:[#allocation9 + $0x28] sm:$0xff]   ;;  %v513_v40 = vld [vmem:[#allocation9 + $0x30] sm:$0xff]  }
  0x3c   :  { %v80_v9 = vrot.slane %v79_v7, 2  ;;  %v510_v37 = vld [vmem:[#allocation9 + $0x18] sm:$0xff]  }
  0x3d   :  { %454 = vmatpush3.bf16.msra.mxu0 %v500_v2  ;;  %v514_v41 = vld [vmem:[#allocation9 + $0x38] sm:$0xff]  }
  0x3e   :  { %455 = vmatprep.subr.bf16.mxu0 %v620_v0  ;;  %v81_v10 = vadd.f32 %v80_v9, %v79_v7  ;;  %474 = vmatpush3.bf16.msra.mxu1 %v508_v35  ;;  %v412_v42 = vld [vmem:[%s767_s4] ss:$0 sm:$0xff] }
  0x3f   :  { %475 = vmatprep.subr.bf16.mxu1 %v620_v0  ;;  %v422_v9 = vld [vmem:[%s768_s5] ss:$0 sm:$0xff]  ;;  %s587_s5 = scalar_lea.vmem %s401_s13, 128 }
  0x40   :  { %v82_v11 = vrot.slane %v81_v10, 1  ;;  %p588_p10 = scmp.ne.s32.totalorder %s401_s13, %s587_s5  ;;  %p593_p12 = scmp.lt.s32.totalorder %s587_s5, %s587_s5 }
  0x41   :  { %456 = vmatpush3.bf16.msra.mxu0 %v501_v3 }
  0x42   :  { %457 = vmatprep.subr.bf16.mxu0 %v620_v0  ;;  %v83_v13 = vadd.f32 %v82_v11, %v81_v10  ;;  %476 = vmatpush3.bf16.msra.mxu1 %v509_v36  ;;  %v423_v11 = vld [vmem:[%s769_s6] ss:$0 sm:$0xff]  ;;  %p594_p13 = por %p593_p12, %p592_p11 }
  0x43   :  { %477 = vmatprep.subr.bf16.mxu1 %v620_v0 }
  0x44   :  { %v85_v14 = vmul.f32 0.125, %v83_v13  ;;  %p595_p0 = pnand %p594_p13, %p588_p10 }
  0x45   :  { %458 = vmatpush3.bf16.msra.mxu0 %v502_v5 }
  0x46   :  { %459 = vmatprep.subr.bf16.mxu0 %v620_v0  ;;  %v86_v16 = vsub.f32 %v77_v4, %v85_v14  ;;  %478 = vmatpush3.bf16.msra.mxu1 %v510_v37 }
  0x47   :  { %479 = vmatprep.subr.bf16.mxu1 %v620_v0 }
  0x48   :  { %v87_v17 = vmul.f32 %v86_v16, %v86_v16 }
  0x49   :  { %460 = vmatpush3.bf16.msra.mxu0 %v503_v8 }
  0x4a   :  { %461 = vmatprep.subr.bf16.mxu0 %v620_v0  ;;  %v88_v19 = vrot.slane %v87_v17, 4  ;;  %480 = vmatpush3.bf16.msra.mxu1 %v511_v38 }
  0x4b   :  { %481 = vmatprep.subr.bf16.mxu1 %v620_v0 }
  0x4c   :  { %v89_v20 = vadd.f32 %v88_v19, %v87_v17 }
  0x4d   :  { %462 = vmatpush3.bf16.msra.mxu0 %v504_v12 }
  0x4e   :  { %463 = vmatprep.subr.bf16.mxu0 %v620_v0  ;;  %v90_v21 = vrot.slane %v89_v20, 2  ;;  %482 = vmatpush3.bf16.msra.mxu1 %v512_v39 }
  0x4f   :  { %483 = vmatprep.subr.bf16.mxu1 %v620_v0 }
  0x50   :  { %v91_v22 = vadd.f32 %v90_v21, %v89_v20 }
  0x51   :  { %464 = vmatpush3.bf16.msra.mxu0 %v505_v15  ;;  %v432_v15 = vld [vmem:[%s771_s8] ss:$0 sm:$0xff] }
  0x52   :  { %465 = vmatprep.subr.bf16.mxu0 %v620_v0  ;;  %v92_v23 = vrot.slane %v91_v22, 1  ;;  %484 = vmatpush3.bf16.msra.mxu1 %v513_v40 }
  0x53   :  { %485 = vmatprep.subr.bf16.mxu1 %v620_v0 }
  0x54   :  { %v93_v24 = vadd.f32 %v92_v23, %v91_v22 }
  0x55   :  { %466 = vmatpush3.bf16.msra.mxu0 %v506_v18 }
  0x56   :  { %v94_v25 = vmul.f32 0.125, %v93_v24  ;;  %486 = vmatpush3.bf16.msra.mxu1 %v514_v41 }
  0x58   :  { %v95_v26 = vadd.f32 1e-05, %v94_v25 }
  0x5a   :  { %515 = vrsqrt.f32 %v95_v26 }
  0x64   :  { %v516_v27 = vpop.eup %515 }
  0x65   :  { %v97_v29 = vmul.f32 %v516_v27, %v86_v16 }
  0x67   :  { %v105_v31 = vmul.f32 %v410_v28, %v97_v29 }
  0x69   :  { %v113_v32 = vadd.f32 %v411_v30, %v105_v31 }
  0x6b   :  { %v117_v33 = vpack.c.bf16 %v113_v32, %v113_v32 }
  0x6d   :  { %468 = vmatmul.mubr.bf16.vlgmr.msra.gmra.mrb[0].mxu0 %v117_v33 }
 0x140   :  { %v223_v43 = vpop.f32.mrb[0].mxu0 }
 0x141   :  { %v224_v44 = vadd.f32 %v412_v42, %v223_v43  ;;  %v469_v45 = vpop.f32.mrb[1].mxu0 }
 0x142   :  { %v226_v46 = vpop.f32.mrb[2].mxu0 }
 0x143   :  { %v230_v47 = vmin.f32 %v224_v44, 0.0  ;;  %v470_v48 = vpop.f32.mrb[3].mxu0  ;;  %vm229_vm1 = vcmp.gt.f32.partialorder %v224_v44, 0.0 }
 0x145   :  { %v231_v49 = vmul.f32 1.442695, %v230_v47 }
 0x147   :  { %517 = vpow2.f32 %v231_v49 }
 0x151   :  { %v518_v50 = vpop.eup %517 }
 0x152   :  { %v421_v51 = vadd.f32 -1.0, %v518_v50 }
 0x154   :  { %v234_v52 = vmul.f32 1.6732632, %v421_v51 }
 0x156   :  { %v235_v53 = vsel %vm229_vm1, %v224_v44, %v234_v52 }
 0x157   :  { %v236_v54 = vmul.f32 1.050701, %v235_v53 }
 0x159   :  { %v237_v55 = vrot.slane %v236_v54, 4 }
 0x15b   :  { %v238_v56 = vadd.f32 %v237_v55, %v236_v54 }
 0x15d   :  { %v239_v57 = vrot.slane %v238_v56, 2 }
 0x15f   :  { %v240_v58 = vadd.f32 %v239_v57, %v238_v56 }
 0x161   :  { %v241_v59 = vrot.slane %v240_v58, 1 }
 0x163   :  { %v242_v60 = vadd.f32 %v241_v59, %v240_v58 }
 0x165   :  { %v244_v61 = vmul.f32 0.125, %v242_v60 }
 0x167   :  { %v245_v62 = vsub.f32 %v236_v54, %v244_v61 }
 0x169   :  { %v246_v63 = vmul.f32 %v245_v62, %v245_v62 }
 0x16b   :  { %v247_v0 = vrot.slane %v246_v63, 4 }
 0x16d   :  { %v248_v1 = vadd.f32 %v247_v0, %v246_v63 }
 0x16f   :  { %v249_v2 = vrot.slane %v248_v1, 2 }
 0x171   :  { %v250_v3 = vadd.f32 %v249_v2, %v248_v1 }
 0x173   :  { %v251_v4 = vrot.slane %v250_v3, 1 }
 0x175   :  { %v252_v5 = vadd.f32 %v251_v4, %v250_v3 }
 0x177   :  { %v253_v6 = vmul.f32 0.125, %v252_v5 }
 0x179   :  { %v254_v7 = vadd.f32 1e-05, %v253_v6 }
 0x17b   :  { %519 = vrsqrt.f32 %v254_v7 }
 0x185   :  { %v520_v8 = vpop.eup %519 }
 0x186   :  { %v256_v10 = vmul.f32 %v520_v8, %v245_v62 }
 0x188   :  { %v264_v12 = vmul.f32 %v422_v9, %v256_v10 }
 0x18a   :  { %v272_v13 = vadd.f32 %v423_v11, %v264_v12 }
 0x18c   :  { %v274_v14 = vpack.c.bf16 %v272_v13, %v272_v13 }
 0x18e   :  { %488 = vmatmul.mubr.bf16.vlgmr.msra.gmra.mrb[0].mxu1 %v274_v14 }
 0x261   :  { %v373_v16 = vpop.f32.mrb[0].mxu1 }
 0x262   :  { %v392_v17 = vadd.f32 %v432_v15, %v373_v16  ;;  %v489_v18 = vpop.f32.mrb[1].mxu1 }
 0x263   :  { %v376_v19 = vpop.f32.mrb[2].mxu1 }
 0x264   :  { %393 = vst [vmem:[#allocation10] sm:$0xff] %v392_v17  ;;  %v490_v20 = vpop.f32.mrb[3].mxu1 }
 0x265   :  { %598 = shalt.err (!%p595_p0)
}
 0x266   :  { %s599_s8 = scalar_lea.hbm %s772_s9, 128 }
 0x267   :  { %p600_p1 = scmp.ne.s32.totalorder %s772_s9, %s599_s8  ;;  %p603_p2 = scmp.lt.u32.totalorder %s599_s8, %s772_s9 }
 0x269   :  { %p605_p3 = pnand %p603_p2, %p600_p1 }
 0x26b   :  { %608 = shalt.err (!%p605_p3)
}
 0x26c   :  { %403 = dma.vmem_to_hbm [thread:$0]  %s401_s13, 128, %s772_s9, [#allocation6]  }
 0x26d   :  { %613 = dma.done.wait [#allocation6], 128  }
 0x26e   :  { %614 = vsyncadd [#allocation6], 4294967168 }
 0x26f   :  { %407 = vsyncpa [#allocation5], 1 }
 0x270   :  { %408 = vsyncpa [#allocation8], 1 }
 0x271   :  { %409 = vsyncpa [#allocation6], 1 }

</bundles_post_ra>
